<compile_context>
chip_gen: v6e
topology: v6e:2x2x1
jax: 0.10.0
libtpu: 0.0.40
codegen_flags: <defaults>
</compile_context>

<pallas_src>
import functools

import jax
import jax.numpy as jnp
from jax.experimental import pallas as pl
from jax.experimental.pallas import tpu as pltpu

EPS = 1e-5


def _round_up(v, m):
    return -(-v // m) * m


def _vmem_budgets():
    """(tile_working_set_budget_bytes, vmem_limit_bytes) per TPU generation."""
    vmem = 64 * 1024 * 1024
    try:
        info = pltpu.get_tpu_info()
        vmem = int(getattr(info, "vmem_capacity_bytes", vmem))
    except Exception:
        pass
    if vmem >= 128 * 1024 * 1024:
        # v5e / v6e: 128 MiB physical VMEM.
        return 48 * 1024 * 1024, 96 * 1024 * 1024
    # v7x (64 MiB per TensorCore) or unknown: stay conservative.
    return 20 * 1024 * 1024, 48 * 1024 * 1024


def _bytes_per_feature_resident(n, itemsize):
    # 2x double-buffered input tile + 2x output tile (itemsize each)
    # + in-kernel f32 upcast + one f32 temp (~8 B/elem) per batch row.
    return (4 * itemsize + 8) * n


def _choose_tile_c(n, c128, itemsize, budget):
    """Feature-tile width (multiple of 128) for the resident path."""
    per_group = _bytes_per_feature_resident(n, itemsize) * 128
    max_groups = max(1, budget // max(1, per_group))
    groups = min(c128 // 128, max_groups)
    tc = max(128, groups * 128)
    if c128 >= 256:
        # Guarantee >= 2 feature grid steps (megacore sharding on v7x,
        # double-buffer overlap everywhere).
        tc = min(tc, max(128, (c128 // 256) * 128))
    return tc


def _choose_two_pass_tiles(n, c128, itemsize, budget):
    tc = min(c128, 512)
    per_row = tc * (4 * itemsize + 8)
    tn = max(8, (budget // max(1, per_row)) // 8 * 8)
    tn = min(tn, _round_up(n, 8))
    return tn, tc


# ---------------------------------------------------------------------------
# Resident path: full (N, TC) strip in VMEM per feature tile.
# ---------------------------------------------------------------------------
def _cbn_kernel(x_ref, gamma_ref, beta_ref, o_ref):
    x = x_ref[...].astype(jnp.float32)                       # (N, TC)
    inv_n = jnp.float32(1.0 / x.shape[0])
    mean = jnp.sum(x, axis=0, keepdims=True) * inv_n          # (1, TC)
    d = x - mean
    var = jnp.sum(d * d, axis=0, keepdims=True) * inv_n       # biased variance
    gamma = gamma_ref[...].astype(jnp.float32)                # (1, TC)
    beta = beta_ref[...].astype(jnp.float32)                  # (1, TC)
    scale = jax.lax.rsqrt(var + EPS) * gamma                  # (1, TC)
    o_ref[...] = (d * scale + beta).astype(o_ref.dtype)


# ---------------------------------------------------------------------------
# Large-N path: pass 1 -> per-feature scale/bias, pass 2 -> normalize.
# ---------------------------------------------------------------------------
def _stats_kernel(x_ref, gamma_ref, beta_ref, scale_ref, bias_ref,
                  s_ref, ss_ref, *, n_total, block_n):
    i = pl.program_id(1)  # N-tile index (reduction axis, last/"arbitrary")

    @pl.when(i == 0)
    def _():
        s_ref[...] = jnp.zeros_like(s_ref)
        ss_ref[...] = jnp.zeros_like(ss_ref)

    x = x_ref[...].astype(jnp.float32)                        # (TN, TC)
    rows = jax.lax.broadcasted_iota(jnp.int32, x.shape, 0)
    valid = rows < (n_total - i * block_n)                    # mask padded rows
    x = jnp.where(valid, x, 0.0)
    s_ref[...] += jnp.sum(x, axis=0, keepdims=True)
    ss_ref[...] += jnp.sum(x * x, axis=0, keepdims=True)

    @pl.when(i == pl.num_programs(1) - 1)
    def _():
        inv_n = jnp.float32(1.0 / n_total)
        mean = s_ref[...] * inv_n
        var = jnp.maximum(ss_ref[...] * inv_n - mean * mean, 0.0)
        gamma = gamma_ref[...].astype(jnp.float32)
        beta = beta_ref[...].astype(jnp.float32)
        scale = jax.lax.rsqrt(var + EPS) * gamma
        scale_ref[...] = scale
        bias_ref[...] = beta - mean * scale


def _normalize_kernel(x_ref, scale_ref, bias_ref, o_ref):
    x = x_ref[...].astype(jnp.float32)
    o_ref[...] = (x * scale_ref[...] + bias_ref[...]).astype(o_ref.dtype)


# ---------------------------------------------------------------------------
# Wrapper
# ---------------------------------------------------------------------------
def conditional_batch_norm_1d(x, gamma, beta, *, _force_two_pass=False,
                              _block_n=None):
    """x: (N, C); gamma, beta: (C,). Returns (N, C)."""
    n, c = x.shape
    if n == 1:
        # ConditionalBatchNorm1d: a batch of 1 is returned unchanged.
        return x

    itemsize = jnp.dtype(x.dtype).itemsize
    budget, limit = _vmem_budgets()
    c128 = _round_up(c, 128)
    gamma2d = gamma.reshape(1, c)
    beta2d = beta.reshape(1, c)

    resident_fits = _bytes_per_feature_resident(n, itemsize) * 128 <= budget

    if resident_fits and not _force_two_pass:
        tc = _choose_tile_c(n, c128, itemsize, budget)
        return pl.pallas_call(
            _cbn_kernel,
            out_shape=jax.ShapeDtypeStruct((n, c), x.dtype),
            grid=(pl.cdiv(c, tc),),
            in_specs=[
                pl.BlockSpec((n, tc), lambda j: (0, j)),   # x strip
                pl.BlockSpec((1, tc), lambda j: (0, j)),   # gamma
                pl.BlockSpec((1, tc), lambda j: (0, j)),   # beta
            ],
            out_specs=pl.BlockSpec((n, tc), lambda j: (0, j)),
            compiler_params=pltpu.CompilerParams(
                dimension_semantics=("parallel",),
                vmem_limit_bytes=limit,
            ),
        )(x, gamma2d, beta2d)

    # ---- Large-N two-pass path ----
    tn, tc = _choose_two_pass_tiles(n, c128, itemsize, budget)
    if _block_n is not None:
        tn = max(8, _round_up(_block_n, 8))
    c_tiles = pl.cdiv(c, tc)
    n_tiles = pl.cdiv(n, tn)

    stats_kernel = functools.partial(_stats_kernel, n_total=n, block_n=tn)
    scale, bias = pl.pallas_call(
        stats_kernel,
        out_shape=(jax.ShapeDtypeStruct((1, c), jnp.float32),
                   jax.ShapeDtypeStruct((1, c), jnp.float32)),
        grid=(c_tiles, n_tiles),
        in_specs=[
            pl.BlockSpec((tn, tc), lambda j, i: (i, j)),
            pl.BlockSpec((1, tc), lambda j, i: (0, j)),
            pl.BlockSpec((1, tc), lambda j, i: (0, j)),
        ],
        out_specs=(pl.BlockSpec((1, tc), lambda j, i: (0, j)),
                   pl.BlockSpec((1, tc), lambda j, i: (0, j))),
        scratch_shapes=[pltpu.VMEM((1, tc), jnp.float32),
                        pltpu.VMEM((1, tc), jnp.float32)],
        compiler_params=pltpu.CompilerParams(
            dimension_semantics=("parallel", "arbitrary"),
            vmem_limit_bytes=limit,
        ),
    )(x, gamma2d, beta2d)

    return pl.pallas_call(
        _normalize_kernel,
        out_shape=jax.ShapeDtypeStruct((n, c), x.dtype),
        grid=(c_tiles, n_tiles),
        in_specs=[
            pl.BlockSpec((tn, tc), lambda j, i: (i, j)),
            pl.BlockSpec((1, tc), lambda j, i: (0, j)),
            pl.BlockSpec((1, tc), lambda j, i: (0, j)),
        ],
        out_specs=pl.BlockSpec((tn, tc), lambda j, i: (i, j)),
        compiler_params=pltpu.CompilerParams(
            dimension_semantics=("parallel", "parallel"),
            vmem_limit_bytes=limit,
        ),
    )(x, scale, bias)


def _reference(x, gamma, beta):
    if x.shape[0] == 1:
        return x
    mean = jnp.mean(x, axis=0, keepdims=True)
    var = jnp.mean((x - mean) ** 2, axis=0, keepdims=True)
    return (x - mean) / jnp.sqrt(var + EPS) * gamma[None, :] + beta[None, :]


if __name__ == "__main__":
    key = jax.random.PRNGKey(0)
    N, C = 8, 32  # small (N, C) consistent with BatchNorm1d on 2-D input

    # Nonzero mean / nonunit std to exercise the two-pass variance numerics.
    x = jax.random.normal(key, (N, C), dtype=jnp.float32) * 3.0 + 5.0
    # Parameter init matching nn.BatchNorm1d.__init__:
    gamma = jnp.ones((C,), dtype=jnp.float32)
    beta = jnp.zeros((C,), dtype=jnp.float32)

    out = jax.block_until_ready(conditional_batch_norm_1d(x, gamma, beta))
    ref = _reference(x, gamma, beta)
    assert out.shape == (N, C)
    assert jnp.allclose(out, ref, atol=1e-4, rtol=1e-4), "mismatch (8,32)"

    # C not a multiple of 128: single partial feature tile (masked store path).
    x2 = jax.random.normal(jax.random.PRNGKey(2), (16, 200), dtype=jnp.float32)
    g2 = jax.random.normal(jax.random.PRNGKey(3), (200,), dtype=jnp.float32)
    b2 = jax.random.normal(jax.random.PRNGKey(4), (200,), dtype=jnp.float32)
    out2 = jax.block_until_ready(conditional_batch_norm_1d(x2, g2, b2))
    assert jnp.allclose(out2, _reference(x2, g2, b2), atol=1e-4, rtol=1e-4), \
        "mismatch (16,200)"

    # Multi-tile feature axis (>= 2 grid steps thanks to the megacore cap).
    x3 = jax.random.normal(jax.random.PRNGKey(5), (16, 384), dtype=jnp.float32)
    g3 = jnp.ones((384,), dtype=jnp.float32)
    b3 = jnp.zeros((384,), dtype=jnp.float32)
    out3 = jax.block_until_ready(conditional_batch_norm_1d(x3, g3, b3))
    assert jnp.allclose(out3, _reference(x3, g3, b3), atol=1e-4, rtol=1e-4), \
        "mismatch (16,384)"

    # Large-N two-pass path, forced at small scale (3 N-tiles, last partial).
    x4 = jax.random.normal(jax.random.PRNGKey(6), (40, 384), dtype=jnp.float32)
    out4 = jax.block_until_ready(
        conditional_batch_norm_1d(x4, g3, b3, _force_two_pass=True, _block_n=16))
    assert jnp.allclose(out4, _reference(x4, g3, b3), atol=1e-3, rtol=1e-3), \
        "mismatch (two-pass 40,384)"

    # Batch-size-1 branch: identity passthrough.
    x1 = jax.random.normal(jax.random.PRNGKey(1), (1, C), dtype=jnp.float32)
    out1 = jax.block_until_ready(conditional_batch_norm_1d(x1, gamma, beta))
    assert jnp.array_equal(out1, x1)

    print("KERNEL_OK")
</pallas_src>

<mosaic_0001>
module attributes {stable_mosaic.version = 11 : i64} {
  func.func @_cbn_kernel(%arg0: i32, %arg1: memref<8x128xf32, #tpu.memory_space<vmem>>, %arg2: memref<1x128xf32, #tpu.memory_space<vmem>>, %arg3: memref<1x128xf32, #tpu.memory_space<vmem>>, %arg4: memref<8x128xf32, #tpu.memory_space<vmem>>) attributes {dimension_semantics = [#tpu.dimension_semantics<parallel>], iteration_bounds = array<i64: 1>, scalar_prefetch = 0 : i64, scratch_operands = 0 : i64, tpu.core_type = #tpu.core_type<tc>, window_params = [{transform_indices = @transform_0, window_bounds = array<i64: 8, 128>}, {transform_indices = @transform_1, window_bounds = array<i64: 1, 128>}, {transform_indices = @transform_2, window_bounds = array<i64: 1, 128>}, {transform_indices = @transform_3, window_bounds = array<i64: 8, 128>}]} {
    %c0 = arith.constant 0 : index
    %c0_0 = arith.constant 0 : index
    %0 = vector.load %arg1[%c0, %c0_0] : memref<8x128xf32, #tpu.memory_space<vmem>>, vector<8x128xf32>
    %cst = arith.constant dense<0.000000e+00> : vector<128xf32>
    %1 = vector.multi_reduction <add>, %0, %cst [0] : vector<8x128xf32> to vector<128xf32>
    %2 = vector.shape_cast %1 : vector<128xf32> to vector<1x128xf32>
    %cst_1 = arith.constant 1.250000e-01 : f32
    %3 = vector.broadcast %cst_1 : f32 to vector<1x128xf32>
    %4 = arith.mulf %2, %3 : vector<1x128xf32>
    %5 = vector.broadcast %4 : vector<1x128xf32> to vector<8x128xf32>
    %6 = arith.subf %0, %5 : vector<8x128xf32>
    %7 = arith.mulf %6, %6 : vector<8x128xf32>
    %cst_2 = arith.constant dense<0.000000e+00> : vector<128xf32>
    %8 = vector.multi_reduction <add>, %7, %cst_2 [0] : vector<8x128xf32> to vector<128xf32>
    %9 = vector.shape_cast %8 : vector<128xf32> to vector<1x128xf32>
    %cst_3 = arith.constant 1.250000e-01 : f32
    %10 = vector.broadcast %cst_3 : f32 to vector<1x128xf32>
    %11 = arith.mulf %9, %10 : vector<1x128xf32>
    %c0_4 = arith.constant 0 : index
    %c0_5 = arith.constant 0 : index
    %12 = vector.load %arg2[%c0_4, %c0_5] : memref<1x128xf32, #tpu.memory_space<vmem>>, vector<1x128xf32>
    %c0_6 = arith.constant 0 : index
    %c0_7 = arith.constant 0 : index
    %13 = vector.load %arg3[%c0_6, %c0_7] : memref<1x128xf32, #tpu.memory_space<vmem>>, vector<1x128xf32>
    %cst_8 = arith.constant 9.99999974E-6 : f32
    %14 = vector.broadcast %cst_8 : f32 to vector<1x128xf32>
    %15 = arith.addf %11, %14 : vector<1x128xf32>
    %16 = math.rsqrt %15 : vector<1x128xf32>
    %17 = arith.mulf %16, %12 : vector<1x128xf32>
    %18 = vector.broadcast %17 : vector<1x128xf32> to vector<8x128xf32>
    %19 = arith.mulf %6, %18 : vector<8x128xf32>
    %20 = vector.broadcast %13 : vector<1x128xf32> to vector<8x128xf32>
    %21 = arith.addf %19, %20 : vector<8x128xf32>
    %c0_9 = arith.constant 0 : index
    %c0_10 = arith.constant 0 : index
    %22 = vector.load %arg4[%c0_9, %c0_10] : memref<8x128xf32, #tpu.memory_space<vmem>>, vector<8x128xf32>
    tpu.vector_store %arg4[%c0_9, %c0_10], %21 {strides = array<i32>} : memref<8x128xf32, #tpu.memory_space<vmem>>, vector<8x128xf32>,
    return
  }
  func.func @transform_0(%arg0: i32) -> (i32, i32) {
    %c0_i32 = arith.constant 0 : i32
    %c0_i32_0 = arith.constant 0 : i32
    return %c0_i32, %arg0 : i32, i32
  }
  func.func @transform_1(%arg0: i32) -> (i32, i32) {
    %c0_i32 = arith.constant 0 : i32
    %c0_i32_0 = arith.constant 0 : i32
    return %c0_i32, %arg0 : i32, i32
  }
  func.func @transform_2(%arg0: i32) -> (i32, i32) {
    %c0_i32 = arith.constant 0 : i32
    %c0_i32_0 = arith.constant 0 : i32
    return %c0_i32, %arg0 : i32, i32
  }
  func.func @transform_3(%arg0: i32) -> (i32, i32) {
    %c0_i32 = arith.constant 0 : i32
    %c0_i32_0 = arith.constant 0 : i32
    return %c0_i32, %arg0 : i32, i32
  }
}

</mosaic_0001>

<bundles_post_ra>
// kernel: tpu_custom_call.1
= control target key start
LH: loop header
LB: loop body
LE: loop exit
PB: predicated region body
PF: predicated region fallthrough
CT: control target
= control target key end

     0   :  { %8 = vsyncpa [#allocation3], 0  ;;  %s160_s0 = inlined_call_operand.hbm [shape: f32[8,32], index: 0, kind: input, shape index: {}]   ;;  %s161_s1 = inlined_call_operand.vmem [shape: f32[1,32], index: 1, kind: input, shape index: {}]   ;;  %s162_s2 = inlined_call_operand.vmem [shape: f32[1,32], index: 2, kind: input, shape index: {}]   ;;  %s163_s3 = inlined_call_operand.hbm [shape: f32[8,32], index: 3, kind: output, shape index: {}]  }
   0x1   :  { %9 = vsyncpa [#allocation4], 0  ;;  %s126_s12 = smov [#allocation2]  }
   0x2   :  { %s16_s13 = sshll.u32 %s126_s12, 4  ;;  %s17_s13 = int_to_ptr.vmem [resolvable:$true] %s16_s13 }
   0x3   :  { %s90_s14 = scalar_lea.vmem %s17_s13, 128  ;;  %p95_p1 = scmp.lt.s32.totalorder %s17_s13, %s17_s13 }
   0x4   :  { %p91_p0 = scmp.ne.s32.totalorder %s17_s13, %s90_s14  ;;  %p96_p2 = scmp.lt.s32.totalorder %s90_s14, %s90_s14 }
   0x6   :  { %p97_p3 = por %p96_p2, %p95_p1 }
   0x8   :  { %p98_p4 = pnand %p97_p3, %p91_p0 }
   0xa   :  { %101 = shalt.err (!%p98_p4)
}
   0xb   :  { %19 = dma.hbm_to_vmem [thread:$0]  %s160_s0, 128, %s17_s13, [#allocation3]  }
   0xc   :  { %122 = dma.done.wait [#allocation3], 128  }
   0xd   :  { %123 = vsyncadd [#allocation3], 4294967168  ;;  %v27_v0 = vld [vmem:[#allocation2] sm:$0xff]  ;;  %v49_v18 = vlaneseq  ;;  %s127_s20 = smov [#allocation5]  }
   0xe   :  { %v28_v1 = vrot.slane %v27_v0, 4  ;;  %v44_v20 = vld [vmem:[%s161_s1] sm:$0x1]  ;;  %s68_s21 = sshll.u32 %s127_s20, 4  ;;  %s69_s21 = int_to_ptr.vmem [resolvable:$true] %s68_s21 }
   0xf   :  { %v50_v19 = vshrl.u32 %v49_v18, 7  ;;  %v77_v25 = vld [vmem:[%s162_s2] ss:$0 sm:$0xff]  ;;  %s102_s22 = scalar_lea.vmem %s69_s21, 128  ;;  %p107_p6 = scmp.lt.s32.totalorder %s69_s21, %s69_s21 }
  0x10   :  { %v29_v2 = vadd.f32 %v28_v1, %v27_v0  ;;  %p103_p5 = scmp.ne.s32.totalorder %s69_s21, %s102_s22  ;;  %p108_p7 = scmp.lt.s32.totalorder %s102_s22, %s102_s22 }
  0x11   :  { %v51_v21 = vsub.s32 0, %v50_v19 }
  0x12   :  { %v30_v3 = vrot.slane %v29_v2, 2  ;;  %p109_p8 = por %p108_p7, %p107_p6 }
  0x14   :  { %v31_v4 = vadd.f32 %v30_v3, %v29_v2  ;;  %p110_p9 = pnand %p109_p8, %p103_p5 }
  0x16   :  { %v32_v5 = vrot.slane %v31_v4, 1 }
  0x18   :  { %v33_v6 = vadd.f32 %v32_v5, %v31_v4 }
  0x1a   :  { %v34_v7 = vmul.f32 0.125, %v33_v6 }
  0x1c   :  { %v35_v8 = vsub.f32 %v27_v0, %v34_v7 }
  0x1e   :  { %v36_v9 = vmul.f32 %v35_v8, %v35_v8 }
  0x20   :  { %v37_v10 = vrot.slane %v36_v9, 4 }
  0x22   :  { %v38_v11 = vadd.f32 %v37_v10, %v36_v9 }
  0x24   :  { %v39_v12 = vrot.slane %v38_v11, 2 }
  0x26   :  { %v40_v13 = vadd.f32 %v39_v12, %v38_v11 }
  0x28   :  { %v41_v14 = vrot.slane %v40_v13, 1 }
  0x2a   :  { %v42_v15 = vadd.f32 %v41_v14, %v40_v13 }
  0x2c   :  { %v43_v16 = vmul.f32 0.125, %v42_v15 }
  0x2e   :  { %v46_v17 = vadd.f32 1e-05, %v43_v16 }
  0x30   :  { %80 = vrsqrt.f32 %v46_v17 }
  0x3d   :  { %v81_v22 = vpop.eup %80 }
  0x3e   :  { %v48_v23 = vmul.f32 %v81_v22, %v44_v20 }
  0x40   :  { %v52_v24 = vrot.slane %v48_v23, %v51_v21 }
  0x42   :  { %v53_v26 = vmul.f32 %v52_v24, %v35_v8 }
  0x44   :  { %v60_v27 = vadd.f32 %v77_v25, %v53_v26 }
  0x46   :  { %61 = vst [vmem:[#allocation5] sm:$0xff] %v60_v27 }
  0x47   :  { %113 = shalt.err (!%p110_p9)
}
  0x48   :  { %71 = dma.vmem_to_hbm [thread:$0]  %s69_s21, 128, %s163_s3, [#allocation4]  }
  0x49   :  { %124 = dma.done.wait [#allocation4], 128  }
  0x4a   :  { %125 = vsyncadd [#allocation4], 4294967168 }
  0x4b   :  { %75 = vsyncpa [#allocation3], 1 }
  0x4c   :  { %76 = vsyncpa [#allocation4], 1 }

</bundles_post_ra>
